<compile_context>
chip_gen: v6e
topology: v6e:2x2x1
jax: 0.10.0
libtpu: 0.0.40
codegen_flags: <defaults>
</compile_context>

<pallas_src>
import functools
import math
from typing import NamedTuple, Tuple

import jax
import jax.numpy as jnp
import numpy as np
from jax.experimental import pallas as pl
from jax.experimental.pallas import tpu as pltpu

LANE = 128      # vreg lane width   -> lane-dense last dim (N)
SUBLANE = 8     # vreg sublane width -> K padded to multiples of 8


def _round_up(x, m):
    return (x + m - 1) // m * m


class MLPMeta(NamedTuple):
    """Static (hashable) packing metadata, computed once at init."""
    layer_dims: Tuple[Tuple[int, int], ...]   # real (d_in, d_out) per layer
    kpads: Tuple[int, ...]                    # round_up(d_in, 8) per layer
    offsets: Tuple[int, ...]                  # row offset of layer i in w_cat


# ----------------------------------------------------------------------------
# Fused kernel: all layers in one pallas_call, layer loop statically unrolled
# ----------------------------------------------------------------------------
def _fused_mlp_kernel(x_ref, w_ref, b_ref, o_ref, *, meta):
    """x_ref: (Bpad, 128) f32, w_ref: (K_total, 128) bf16, b_ref: (L, 128) f32."""
    h = x_ref[...]                                        # f32, lives in vregs
    n_layers = len(meta.kpads)
    for i in range(n_layers):                             # static unroll
        k, off = meta.kpads[i], meta.offsets[i]
        w = w_ref[off:off + k, :]                         # (k, 128) bf16, static slice
        lhs = h[:, :k].astype(jnp.bfloat16)               # bf16 MXU operands
        h = jnp.dot(lhs, w, preferred_element_type=jnp.float32) + b_ref[i:i + 1, :]
        if i < n_layers - 1:
            h = jnp.maximum(h, 0.0)                       # f32 VPU epilogue (free under MXU)
    o_ref[...] = h                                        # lane-dense (Bpad,128) store


@functools.partial(jax.jit, static_argnames=("meta",))
def mlp_forward(x, w_cat, b_cat, meta):
    batch, din = x.shape
    dout = meta.layer_dims[-1][1]
    b_pad = _round_up(batch, SUBLANE)
    n_layers = len(meta.kpads)
    k_total = w_cat.shape[0]

    # Zero-pad x to a lane/sublane-dense tile *inside* the jitted path.
    # Padding is exact: padded lanes/rows stay 0 through bias/ReLU/matmul.
    x_pad = jnp.zeros((b_pad, LANE), jnp.float32).at[:batch, :din].set(x)

    # Cost estimate from the real (unpadded) layer dims + actual bytes moved.
    flops = int(sum(2 * batch * di * do + batch * do for di, do in meta.layer_dims))
    bytes_accessed = int(x_pad.size * 4 + w_cat.size * 2 + b_cat.size * 4
                         + b_pad * LANE * 4)

    out_pad = pl.pallas_call(
        functools.partial(_fused_mlp_kernel, meta=meta),
        out_shape=jax.ShapeDtypeStruct((b_pad, LANE), jnp.float32),
        in_specs=[
            pl.BlockSpec((b_pad, LANE), lambda: (0, 0)),
            pl.BlockSpec((k_total, LANE), lambda: (0, 0)),
            pl.BlockSpec((n_layers, LANE), lambda: (0, 0)),
        ],
        out_specs=pl.BlockSpec((b_pad, LANE), lambda: (0, 0)),
        cost_estimate=pl.CostEstimate(flops=flops, transcendentals=0,
                                      bytes_accessed=bytes_accessed),
        compiler_params=pltpu.CompilerParams(vmem_limit_bytes=2 * 1024 * 1024),
    )(x_pad, w_cat, b_cat)

    return out_pad[:batch, :dout]


# ----------------------------------------------------------------------------
# Parameter construction (deterministic, mirrors the PyTorch __init__)
# ----------------------------------------------------------------------------
def init_params(key, input_size, output_size, nlayers=4):
    sizes = np.linspace(input_size, output_size, nlayers).astype(np.int32)
    dims = [(int(sizes[i]), int(sizes[i + 1])) for i in range(len(sizes) - 1)]
    dims.append((int(sizes[-1]), int(output_size)))       # output layer

    params = []
    for din, dout in dims:
        key, kw, kb = jax.random.split(key, 3)
        # xavier_normal_ on weights (as in module.apply); stored as (in, out)
        std = math.sqrt(2.0 / (din + dout))
        w = std * jax.random.normal(kw, (din, dout), dtype=jnp.float32)
        # PyTorch default bias init: U(-1/sqrt(fan_in), 1/sqrt(fan_in))
        bound = 1.0 / math.sqrt(din)
        b = jax.random.uniform(kb, (dout,), dtype=jnp.float32,
                               minval=-bound, maxval=bound)
        params.append((w, b))
    return params


def pack_params(params):
    """Pack ONCE at init.

    Each W_i is zero-padded only to (round_up(d_in,8), 128) and all layers are
    concatenated along K; biases are stacked as (L, 128) f32.  Weights go to
    bfloat16 (f32 accumulation is kept in-kernel via preferred_element_type).
    """
    layer_dims = tuple((int(w.shape[0]), int(w.shape[1])) for w, _ in params)
    kpads = tuple(_round_up(di, SUBLANE) for di, _ in layer_dims)
    offsets = tuple(int(o) for o in np.cumsum((0,) + kpads[:-1]))
    k_total = int(sum(kpads))
    assert all(do <= LANE for _, do in layer_dims) and all(k <= LANE for k in kpads)

    w_cat = np.zeros((k_total, LANE), np.float32)
    b_cat = np.zeros((len(params), LANE), np.float32)
    for i, (w, b) in enumerate(params):
        di, do = layer_dims[i]
        w_cat[offsets[i]:offsets[i] + di, :do] = np.asarray(w)
        b_cat[i, :do] = np.asarray(b).reshape(-1)

    meta = MLPMeta(layer_dims=layer_dims, kpads=kpads, offsets=offsets)
    return (jnp.asarray(w_cat, dtype=jnp.bfloat16),
            jnp.asarray(b_cat, dtype=jnp.float32),
            meta)


# ----------------------------------------------------------------------------
# References
# ----------------------------------------------------------------------------
def mlp_reference_f32(x, params):
    *hidden, output = params
    for w, b in hidden:
        x = jnp.maximum(jnp.dot(x, w) + b, 0.0)
    w, b = output
    return jnp.dot(x, w) + b


def mlp_reference_bf16(x, params):
    """Mirrors the kernel's bf16-operand / f32-accumulate arithmetic."""
    h = x
    n = len(params)
    for i, (w, b) in enumerate(params):
        h = jnp.dot(h.astype(jnp.bfloat16), w.astype(jnp.bfloat16),
                    preferred_element_type=jnp.float32) + b
        if i < n - 1:
            h = jnp.maximum(h, 0.0)
    return h


# ----------------------------------------------------------------------------
if __name__ == "__main__":
    input_size, output_size, batch = 32, 8, 2

    key = jax.random.PRNGKey(0)
    key, kx = jax.random.split(key)
    x = jax.random.normal(kx, (batch, input_size), dtype=jnp.float32)

    params = init_params(key, input_size, output_size, nlayers=4)
    w_cat, b_cat, meta = pack_params(params)          # packed once (hoisted)

    out = jax.block_until_ready(mlp_forward(x, w_cat, b_cat, meta))
    ref16 = jax.block_until_ready(mlp_reference_bf16(x, params))
    ref32 = jax.block_until_ready(mlp_reference_f32(x, params))

    assert out.shape == (batch, output_size), out.shape
    # Tight check against the bf16-operand reference (same arithmetic path).
    np.testing.assert_allclose(np.asarray(out), np.asarray(ref16),
                               rtol=1e-3, atol=1e-3)
    # Loose check against the f32 reference (bf16 weight quantization).
    np.testing.assert_allclose(np.asarray(out), np.asarray(ref32),
                               rtol=5e-2, atol=5e-2)
    print("KERNEL_OK")
</pallas_src>

<mosaic_0001>
module attributes {stable_mosaic.version = 11 : i64} {
  func.func @_fused_mlp_kernel(%arg0: memref<8x128xf32, #tpu.memory_space<vmem>>, %arg1: memref<80x128xbf16, #tpu.memory_space<vmem>>, %arg2: memref<4x128xf32, #tpu.memory_space<vmem>>, %arg3: memref<8x128xf32, #tpu.memory_space<vmem>>) attributes {dimension_semantics = [], scalar_prefetch = 0 : i64, scratch_operands = 0 : i64, tpu.core_type = #tpu.core_type<tc>} {
    %c0 = arith.constant 0 : index
    %c0_0 = arith.constant 0 : index
    %0 = vector.load %arg0[%c0, %c0_0] : memref<8x128xf32, #tpu.memory_space<vmem>>, vector<8x128xf32>
    %c0_1 = arith.constant 0 : index
    %c0_2 = arith.constant 0 : index
    %1 = vector.load %arg1[%c0_1, %c0_2] : memref<80x128xbf16, #tpu.memory_space<vmem>>, vector<32x128xbf16>
    %2 = vector.extract_strided_slice %0 {offsets = [0, 0], sizes = [8, 32], strides = [1, 1]} : vector<8x128xf32> to vector<8x32xf32>
    %3 = arith.truncf %2 : vector<8x32xf32> to vector<8x32xbf16>
    %cst = arith.constant dense<0.000000e+00> : vector<8x128xf32>
    %4 = tpu.matmul %3, %1, %cst {dimension_numbers = #tpu.dot_dimension_numbers<[1], [0], [0], [1], [0, 0, 1, 1], [], []>} : vector<8x32xbf16>, vector<32x128xbf16>, vector<8x128xf32> -> vector<8x128xf32>
    %c0_3 = arith.constant 0 : index
    %c0_4 = arith.constant 0 : index
    %5 = vector.load %arg2[%c0_3, %c0_4] : memref<4x128xf32, #tpu.memory_space<vmem>>, vector<1x128xf32>
    %6 = vector.broadcast %5 : vector<1x128xf32> to vector<8x128xf32>
    %7 = arith.addf %4, %6 : vector<8x128xf32>
    %cst_5 = arith.constant 0.000000e+00 : f32
    %8 = vector.broadcast %cst_5 : f32 to vector<8x128xf32>
    %9 = arith.maximumf %7, %8 : vector<8x128xf32>
    %c32 = arith.constant 32 : index
    %c0_6 = arith.constant 0 : index
    %10 = vector.load %arg1[%c32, %c0_6] : memref<80x128xbf16, #tpu.memory_space<vmem>>, vector<24x128xbf16>
    %11 = vector.extract_strided_slice %9 {offsets = [0, 0], sizes = [8, 24], strides = [1, 1]} : vector<8x128xf32> to vector<8x24xf32>
    %12 = arith.truncf %11 : vector<8x24xf32> to vector<8x24xbf16>
    %cst_7 = arith.constant dense<0.000000e+00> : vector<8x128xf32>
    %13 = tpu.matmul %12, %10, %cst_7 {dimension_numbers = #tpu.dot_dimension_numbers<[1], [0], [0], [1], [0, 0, 1, 1], [], []>} : vector<8x24xbf16>, vector<24x128xbf16>, vector<8x128xf32> -> vector<8x128xf32>
    %c1 = arith.constant 1 : index
    %c0_8 = arith.constant 0 : index
    %14 = vector.load %arg2[%c1, %c0_8] : memref<4x128xf32, #tpu.memory_space<vmem>>, vector<1x128xf32>
    %15 = vector.broadcast %14 : vector<1x128xf32> to vector<8x128xf32>
    %16 = arith.addf %13, %15 : vector<8x128xf32>
    %cst_9 = arith.constant 0.000000e+00 : f32
    %17 = vector.broadcast %cst_9 : f32 to vector<8x128xf32>
    %18 = arith.maximumf %16, %17 : vector<8x128xf32>
    %c56 = arith.constant 56 : index
    %c0_10 = arith.constant 0 : index
    %19 = vector.load %arg1[%c56, %c0_10] : memref<80x128xbf16, #tpu.memory_space<vmem>>, vector<16x128xbf16>
    %20 = vector.extract_strided_slice %18 {offsets = [0, 0], sizes = [8, 16], strides = [1, 1]} : vector<8x128xf32> to vector<8x16xf32>
    %21 = arith.truncf %20 : vector<8x16xf32> to vector<8x16xbf16>
    %cst_11 = arith.constant dense<0.000000e+00> : vector<8x128xf32>
    %22 = tpu.matmul %21, %19, %cst_11 {dimension_numbers = #tpu.dot_dimension_numbers<[1], [0], [0], [1], [0, 0, 1, 1], [], []>} : vector<8x16xbf16>, vector<16x128xbf16>, vector<8x128xf32> -> vector<8x128xf32>
    %c2 = arith.constant 2 : index
    %c0_12 = arith.constant 0 : index
    %23 = vector.load %arg2[%c2, %c0_12] : memref<4x128xf32, #tpu.memory_space<vmem>>, vector<1x128xf32>
    %24 = vector.broadcast %23 : vector<1x128xf32> to vector<8x128xf32>
    %25 = arith.addf %22, %24 : vector<8x128xf32>
    %cst_13 = arith.constant 0.000000e+00 : f32
    %26 = vector.broadcast %cst_13 : f32 to vector<8x128xf32>
    %27 = arith.maximumf %25, %26 : vector<8x128xf32>
    %c72 = arith.constant 72 : index
    %c0_14 = arith.constant 0 : index
    %28 = vector.load %arg1[%c72, %c0_14] : memref<80x128xbf16, #tpu.memory_space<vmem>>, vector<8x128xbf16>
    %29 = vector.extract_strided_slice %27 {offsets = [0, 0], sizes = [8, 8], strides = [1, 1]} : vector<8x128xf32> to vector<8x8xf32>
    %30 = arith.truncf %29 : vector<8x8xf32> to vector<8x8xbf16>
    %cst_15 = arith.constant dense<0.000000e+00> : vector<8x128xf32>
    %31 = tpu.matmul %30, %28, %cst_15 {dimension_numbers = #tpu.dot_dimension_numbers<[1], [0], [0], [1], [0, 0, 1, 1], [], []>} : vector<8x8xbf16>, vector<8x128xbf16>, vector<8x128xf32> -> vector<8x128xf32>
    %c3 = arith.constant 3 : index
    %c0_16 = arith.constant 0 : index
    %32 = vector.load %arg2[%c3, %c0_16] : memref<4x128xf32, #tpu.memory_space<vmem>>, vector<1x128xf32>
    %33 = vector.broadcast %32 : vector<1x128xf32> to vector<8x128xf32>
    %34 = arith.addf %31, %33 : vector<8x128xf32>
    %c0_17 = arith.constant 0 : index
    %c0_18 = arith.constant 0 : index
    %35 = vector.load %arg3[%c0_17, %c0_18] : memref<8x128xf32, #tpu.memory_space<vmem>>, vector<8x128xf32>
    tpu.vector_store %arg3[%c0_17, %c0_18], %34 {strides = array<i32>} : memref<8x128xf32, #tpu.memory_space<vmem>>, vector<8x128xf32>,
    return
  }
}

</mosaic_0001>

<bundles_post_ra>
// kernel: mlp_forward.1
= control target key start
LH: loop header
LB: loop body
LE: loop exit
PB: predicated region body
PF: predicated region fallthrough
CT: control target
= control target key end

     0   :  { %8 = vsyncpa [#allocation3], 0  ;;  %s366_s12 = smov [#allocation2]   ;;  %s418_s0 = inlined_call_operand.vmem [shape: f32[8,128], index: 0, kind: input, shape index: {}]   ;;  %s419_s1 = inlined_call_operand.hbm [shape: bf16[80,128], index: 1, kind: input, shape index: {}]   ;;  %s420_s2 = inlined_call_operand.vmem [shape: f32[4,128], index: 2, kind: input, shape index: {}]   ;;  %s421_s3 = inlined_call_operand.vmem [shape: f32[8,128], index: 3, kind: output, shape index: {}]  }
   0x1   :  { %s16_s13 = sshll.u32 %s366_s12, 4  ;;  %s17_s13 = int_to_ptr.vmem [resolvable:$true] %s16_s13 }
   0x2   :  { %s352_s14 = scalar_lea.vmem %s17_s13, 640  ;;  %p357_p1 = scmp.lt.s32.totalorder %s17_s13, %s17_s13 }
   0x3   :  { %p353_p0 = scmp.ne.s32.totalorder %s17_s13, %s352_s14  ;;  %p358_p2 = scmp.lt.s32.totalorder %s352_s14, %s352_s14 }
   0x5   :  { %p359_p3 = por %p358_p2, %p357_p1 }
   0x7   :  { %p360_p4 = pnand %p359_p3, %p353_p0 }
   0x9   :  { %363 = shalt.err (!%p360_p4)
}
   0xa   :  { %s367_s15 = smov 64   ;;  %s368_s16 = smov 4  }
   0xb   :  { %22 = dma.hbm_to_vmem [thread:$0]  %s419_s1, 640, %s17_s13, [#allocation3], %s367_s15, %s367_s15, %s368_s16  }
   0xc   :  { %364 = dma.done.wait [#allocation3], 640  }
   0xd   :  { %365 = vsyncadd [#allocation3], 4294966656  ;;  %v369_v0 = vmov 0.0   ;;  %vm370_vm0 = vmmov 0   ;;  %v339_v1 = vld [vmem:[#allocation2 + $0x8] sm:$0xff]   ;;  %v340_v2 = vld [vmem:[#allocation2] sm:$0xff]  }
   0xe   :  { %306 = vmatprep.subr.bf16.mxu0 %v369_v0  ;;  %310 = vmatprep.mubr.msk.bf16.mxu0 %vm370_vm0, %v369_v0  ;;  %v29_v3 = vld [vmem:[%s418_s0] sm:$0xff]  ;;  %vm52_vm1 = vcmask 261120   ;;  %v341_v5 = vld [vmem:[#allocation2 + $0x18] ss:$0 sps:$4 sm:$0xff]   ;;  %vm119_vm2 = vcmask 1043456   ;;  %v342_v7 = vld [vmem:[#allocation2 + $0x10] sm:$0xff]  }
   0xf   :  { %314 = vmatprep.subr.bf16.mxu1 %v369_v0  ;;  %318 = vmatprep.mubr.msk.bf16.mxu1 %vm370_vm0, %v369_v0  ;;  %v34_v4 = vpack.c.bf16 %v29_v3, %v29_v3  ;;  %v121_v6 = vsel %vm119_vm2, %v341_v5, 0  ;;  %v343_v8 = vld [vmem:[#allocation2 + $0x1c] sm:$0xff]   ;;  %v223_v12 = vld [vmem:[#allocation2 + $0x24] sm:$0xf]  ;;  %vm115_vm3 = vcmask 195584   ;;  %vm178_vm4 = vcmask 130048  }
  0x10   :  { %307 = vmatpush3.bf16.msra.mxu0 %v339_v1  ;;  %315 = vmatpush3.bf16.msra.mxu1 %v121_v6  ;;  %v283_v9 = vld [vmem:[%s420_s2] ss:$0 sm:$0xff]  ;;  %v235_v17 = vsel %vm119_vm2, %v223_v12, 0  ;;  %v287_v19 = vld [vmem:[%s420_s2 + $0x1] ss:$0 sm:$0xff]  ;;  %vm230_vm5 = vcmask 64512  }
  0x11   :  { %308 = vmatprep.subr.bf16.mxu0 %v369_v0  ;;  %316 = vmatprep.subr.bf16.mxu1 %v369_v0  ;;  %v291_v27 = vld [vmem:[%s420_s2 + $0x2] ss:$0 sm:$0xff]  ;;  %v294_v35 = vld [vmem:[%s420_s2 + $0x3] ss:$0 sm:$0xff] }
  0x14   :  { %309 = vmatpush3.bf16.msra.mxu0 %v340_v2  ;;  %317 = vmatpush3.bf16.msra.mxu1 %v342_v7 }
  0x15   :  { %322 = vmatprep.subr.bf16.mxu0 %v369_v0  ;;  %328 = vmatprep.subr.bf16.mxu1 %v369_v0 }
  0x17   :  { %311 = vmatmul.mubr.msk.bf16.vlgmr.msra.gmra.mxu0 %vm52_vm1, %v34_v4 }
  0x18   :  { %324 = vmatprep.mubr.msk.bf16.mxu0 %vm370_vm0, %v369_v0  ;;  %323 = vmatpush3.bf16.msra.mxu0 %v343_v8 }
  0xd7   :  { %v90_v10 = vpop.f32.mrf.mxu0 }
  0xd8   :  { %v91_v11 = vadd.f32 %v283_v9, %v90_v10 }
  0xd9   :  { %v312_v13 = vpop.f32.mrf.mxu0 }
  0xda   :  { %v96_v14 = vmax.f32 %v91_v11, 0.0 }
  0xdb   :  { %v93_v15 = vpop.f32.mrf.mxu0 }
  0xdc   :  { %v100_v16 = vpack.c.bf16 %v96_v14, %v96_v14 }
  0xdd   :  { %v313_v18 = vpop.f32.mrf.mxu0 }
  0xde   :  { %319 = vmatmul.mubr.msk.bf16.vlgmr.msra.gmra.mxu1 %vm115_vm3, %v100_v16 }
  0xdf   :  { %329 = vmatpush3.bf16.msra.mxu1 %v235_v17  ;;  %330 = vmatprep.mubr.msk.bf16.mxu1 %vm370_vm0, %v369_v0 }
 0x19e   :  { %v157_v20 = vpop.f32.mrf.mxu1 }
 0x19f   :  { %v158_v21 = vadd.f32 %v287_v19, %v157_v20 }
 0x1a0   :  { %v320_v22 = vpop.f32.mrf.mxu1 }
 0x1a1   :  { %v163_v23 = vmax.f32 %v158_v21, 0.0 }
 0x1a2   :  { %v160_v24 = vpop.f32.mrf.mxu1 }
 0x1a3   :  { %v166_v25 = vpack.c.bf16 %v163_v23, %v163_v23 }
 0x1a4   :  { %v321_v26 = vpop.f32.mrf.mxu1 }
 0x1a5   :  { %325 = vmatmul.mubr.msk.bf16.vlgmr.msra.gmra.mxu0 %vm178_vm4, %v166_v25 }
 0x265   :  { %v216_v28 = vpop.f32.mrf.mxu0 }
 0x266   :  { %v217_v29 = vadd.f32 %v291_v27, %v216_v28 }
 0x267   :  { %v326_v30 = vpop.f32.mrf.mxu0 }
 0x268   :  { %v222_v31 = vmax.f32 %v217_v29, 0.0 }
 0x269   :  { %v219_v32 = vpop.f32.mrf.mxu0 }
 0x26a   :  { %v224_v33 = vpack.c.bf16 %v222_v31, %v222_v31 }
 0x26b   :  { %v327_v34 = vpop.f32.mrf.mxu0 }
 0x26c   :  { %331 = vmatmul.mubr.msk.bf16.vlgmr.msra.gmra.mxu1 %vm230_vm5, %v224_v33 }
 0x32c   :  { %v271_v36 = vpop.f32.mrf.mxu1 }
 0x32d   :  { %v272_v37 = vadd.f32 %v294_v35, %v271_v36 }
 0x32e   :  { %v332_v38 = vpop.f32.mrf.mxu1 }
 0x32f   :  { %277 = vst [vmem:[%s421_s3] sm:$0xff] %v272_v37 }
 0x330   :  { %v274_v39 = vpop.f32.mrf.mxu1 }
 0x332   :  { %v333_v40 = vpop.f32.mrf.mxu1 }
 0x333   :  { %282 = vsyncpa [#allocation3], 1 }

</bundles_post_ra>
